<compile_context>
chip_gen: v7x
topology: tpu7x:2x2x1
jax: 0.10.0
libtpu: 0.0.40
codegen_flags: <defaults>
</compile_context>

<pallas_src>
import functools

import jax
import jax.numpy as jnp
from jax.experimental import pallas as pl
from jax.experimental.pallas import tpu as pltpu


# --------------------------------------------------------------------------- #
# Sizing helpers
# --------------------------------------------------------------------------- #
def _vmem_capacity_bytes():
    try:
        return int(pltpu.get_tpu_info().vmem_capacity_bytes)
    except Exception:
        return 64 << 20  # conservative (v7x per-TensorCore VMEM)


def _pick_hw_tile(hw, bytes_per_lane, budget_bytes, max_tile=None):
    """Largest multiple-of-128 lane count whose buffered footprint fits the budget.
    Degrades gracefully to 128 lanes (never raises); capped at ceil(hw/128)*128."""
    hw_ceil = pl.cdiv(hw, 128) * 128
    max_lanes = max(int(budget_bytes) // max(int(bytes_per_lane), 1), 128)
    t = max((max_lanes // 128) * 128, 128)
    t = min(t, hw_ceil)
    if max_tile is not None:
        t = max(128, min(t, (int(max_tile) // 128) * 128))
    return t


# --------------------------------------------------------------------------- #
# Shared tiny gate math (f32, VPU-only: no degenerate N=1 MXU matmuls)
# --------------------------------------------------------------------------- #
def _gate_from_pooled(pooled, wr_t_ref, br_ref, we_ref, be_ref):
    # pooled: (C, 1) f32. wr_t: (C, C_se); br: (1, C_se); we: (C, C_se); be: (C, 1).
    r = jnp.sum(wr_t_ref[...] * pooled, axis=0, keepdims=True) + br_ref[...]  # (1, C_se)
    r = r * jax.nn.sigmoid(r)                                                 # SiLU (swish)
    e = jnp.sum(we_ref[...] * r, axis=-1, keepdims=True) + be_ref[...]        # (C, 1)
    return jax.nn.sigmoid(e)                                                  # (C, 1) f32


# --------------------------------------------------------------------------- #
# Fused kernel: pool + gate + scale in one HBM read / one HBM write per batch
# --------------------------------------------------------------------------- #
def _fused_kernel(x_ref, wr_t_ref, br_ref, we_ref, be_ref, o_ref, *, inv_hw):
    # x_ref / o_ref: (1, C, HW) in the activation's native dtype.
    x = x_ref[0]                                                              # (C, HW)
    pooled = jnp.sum(x.astype(jnp.float32), axis=-1, keepdims=True) * inv_hw  # (C, 1) f32
    gate = _gate_from_pooled(pooled, wr_t_ref, br_ref, we_ref, be_ref)        # (C, 1) f32
    # Native-dtype multiply (bf16-native on v6e/v7x; f32 inputs stay f32).
    o_ref[0] = x_ref[0] * gate.astype(o_ref.dtype)


# --------------------------------------------------------------------------- #
# Fallback kernel 1: streaming pool + gate (HW-reduction axis must stay innermost)
# --------------------------------------------------------------------------- #
def _pool_gate_kernel(x_ref, wr_t_ref, br_ref, we_ref, be_ref, gate_ref, acc_ref,
                      *, hw, inv_hw):
    t = pl.program_id(1)

    @pl.when(t == 0)
    def _():
        acc_ref[...] = jnp.zeros_like(acc_ref)

    tile = x_ref[0].astype(jnp.float32)                                       # (C, T)
    T = tile.shape[-1]
    # Mask OOB lanes of the ragged last tile so garbage never pollutes the sum.
    lane = jax.lax.broadcasted_iota(jnp.int32, tile.shape, 1) + t * T
    tile = jnp.where(lane < hw, tile, 0.0)
    acc_ref[...] += jnp.sum(tile, axis=-1, keepdims=True)                     # (C, 1)

    @pl.when(t == pl.num_programs(1) - 1)
    def _():
        pooled = acc_ref[...] * inv_hw                                        # mean over true HW
        gate_ref[0] = _gate_from_pooled(pooled, wr_t_ref, br_ref, we_ref, be_ref)


# --------------------------------------------------------------------------- #
# Fallback kernel 2: pure elementwise excite/scale (fully parallel, lane-dense)
# --------------------------------------------------------------------------- #
def _scale_kernel(x_ref, gate_ref, o_ref):
    # x_ref/o_ref: (1, C, T) native dtype; gate_ref: (1, C, 1) f32.
    # OOB lanes of the partial edge block are dropped by Pallas' masked store.
    o_ref[0] = x_ref[0] * gate_ref[0].astype(o_ref.dtype)


# --------------------------------------------------------------------------- #
# Wrapper
# --------------------------------------------------------------------------- #
def squeeze_excite(x_nchw, w_reduce, b_reduce, w_expand, b_expand,
                   *, force_two_pass=False, max_hw_tile=None):
    """x_nchw: (B, C, H, W) in its native dtype (f32 or bf16).
    1x1 conv weights accepted as (C_out, C_in) or (C_out, C_in, 1, 1).
    force_two_pass / max_hw_tile are testing knobs (default off)."""
    B, C, H, W = x_nchw.shape
    HW = H * W
    dtype = x_nchw.dtype
    itemsize = jnp.dtype(dtype).itemsize

    w_reduce = w_reduce.reshape(w_reduce.shape[0], -1)        # (C_se, C)
    w_expand = w_expand.reshape(w_expand.shape[0], -1)        # (C, C_se)
    C_se = w_reduce.shape[0]

    # Gate parameters in f32 (tiny; right choice on v5e, negligible elsewhere).
    wr_t = jnp.asarray(w_reduce, jnp.float32).T               # (C, C_se)
    we = jnp.asarray(w_expand, jnp.float32)                   # (C, C_se)
    br = jnp.asarray(b_reduce, jnp.float32).reshape(1, C_se)
    be = jnp.asarray(b_expand, jnp.float32).reshape(C, 1)

    # Flattened spatial axis; no host-side pad (kernels handle ragged edges).
    x = x_nchw.reshape(B, C, HW)

    vmem_cap = _vmem_capacity_bytes()
    vmem_limit = min(vmem_cap // 2, 64 << 20)                 # 64 MiB on v5e/v6e, 32 MiB on v7x
    weight_bytes = 2 * 4 * (2 * C * C_se + C_se + C)          # double-buffered f32 params

    # -------------------- Fused single-pass path (primary) -------------------- #
    fused_budget = min(vmem_cap // 4, 24 << 20)
    fused_ws = 4 * C * HW * itemsize + weight_bytes           # 2 in + 2 out buffers + weights
    if not force_two_pass and fused_ws <= fused_budget:
        # TODO(synk): for B == 1 on v7x the single 'parallel' axis leaves one
        # TensorCore idle; a two-stage pooling split would recover it.
        fused_cost = pl.CostEstimate(
            flops=int(2 * B * C * HW + 4 * B * C * C_se),
            transcendentals=int(B * (C_se + C)),
            bytes_accessed=int(2 * B * C * HW * itemsize + weight_bytes // 2),
        )
        out = pl.pallas_call(
            functools.partial(_fused_kernel, inv_hw=1.0 / HW),
            out_shape=jax.ShapeDtypeStruct((B, C, HW), dtype),
            grid_spec=pltpu.PrefetchScalarGridSpec(
                num_scalar_prefetch=0,
                grid=(B,),
                in_specs=[
                    pl.BlockSpec((1, C, HW), lambda b: (b, 0, 0)),
                    pl.BlockSpec((C, C_se), lambda b: (0, 0)),
                    pl.BlockSpec((1, C_se), lambda b: (0, 0)),
                    pl.BlockSpec((C, C_se), lambda b: (0, 0)),
                    pl.BlockSpec((C, 1), lambda b: (0, 0)),
                ],
                out_specs=pl.BlockSpec((1, C, HW), lambda b: (b, 0, 0)),
            ),
            compiler_params=pltpu.CompilerParams(
                dimension_semantics=("parallel",),
                vmem_limit_bytes=vmem_limit,
            ),
            cost_estimate=fused_cost,
        )(x, wr_t, br, we, be)
        return out.reshape(B, C, H, W)

    # ------------------- Fallback two-pass path (huge slabs) ------------------ #
    tile_budget = min(vmem_cap // 4, 16 << 20)

    # Kernel 1 only double-buffers its x input (gate output + weights are tiny).
    T1 = _pick_hw_tile(HW, 2 * C * itemsize,
                       max(tile_budget - weight_bytes, 128 * 2 * C * itemsize),
                       max_tile=max_hw_tile)
    n_t1 = pl.cdiv(HW, T1)
    gate_cost = pl.CostEstimate(
        flops=int(B * C * HW + 4 * B * C * C_se),
        transcendentals=int(B * (C_se + C)),
        bytes_accessed=int(B * C * HW * itemsize + B * C * 4 + weight_bytes // 2),
    )
    gate = pl.pallas_call(
        functools.partial(_pool_gate_kernel, hw=HW, inv_hw=1.0 / HW),
        out_shape=jax.ShapeDtypeStruct((B, C, 1), jnp.float32),
        grid_spec=pltpu.PrefetchScalarGridSpec(
            num_scalar_prefetch=0,
            # NOTE: the HW-reduction axis must remain innermost; the gate output is
            # only committed on its last iteration.
            grid=(B, n_t1),
            in_specs=[
                pl.BlockSpec((1, C, T1), lambda b, t: (b, 0, t)),
                pl.BlockSpec((C, C_se), lambda b, t: (0, 0)),
                pl.BlockSpec((1, C_se), lambda b, t: (0, 0)),
                pl.BlockSpec((C, C_se), lambda b, t: (0, 0)),
                pl.BlockSpec((C, 1), lambda b, t: (0, 0)),
            ],
            out_specs=pl.BlockSpec((1, C, 1), lambda b, t: (b, 0, 0)),
            scratch_shapes=[pltpu.VMEM((C, 1), jnp.float32)],
        ),
        compiler_params=pltpu.CompilerParams(
            dimension_semantics=("parallel", "arbitrary"),
            vmem_limit_bytes=vmem_limit,
        ),
        cost_estimate=gate_cost,
    )(x, wr_t, br, we, be)

    # Kernel 2 double-buffers both its x input and its output.
    T2 = _pick_hw_tile(HW, 4 * C * itemsize, tile_budget, max_tile=max_hw_tile)
    n_t2 = pl.cdiv(HW, T2)
    scale_cost = pl.CostEstimate(
        flops=int(B * C * HW),
        transcendentals=0,
        bytes_accessed=int(2 * B * C * HW * itemsize + B * C * 4),
    )
    out = pl.pallas_call(
        _scale_kernel,
        out_shape=jax.ShapeDtypeStruct((B, C, HW), dtype),
        grid_spec=pltpu.PrefetchScalarGridSpec(
            num_scalar_prefetch=0,
            grid=(B, n_t2),
            in_specs=[
                pl.BlockSpec((1, C, T2), lambda b, t: (b, 0, t)),
                pl.BlockSpec((1, C, 1), lambda b, t: (b, 0, 0)),
            ],
            out_specs=pl.BlockSpec((1, C, T2), lambda b, t: (b, 0, t)),
        ),
        compiler_params=pltpu.CompilerParams(
            dimension_semantics=("parallel", "parallel"),
            vmem_limit_bytes=vmem_limit,
        ),
        cost_estimate=scale_cost,
    )(x, gate)
    return out.reshape(B, C, H, W)


# --------------------------------------------------------------------------- #
# Pure-JAX reference mirroring the PyTorch forward (f32 math)
# --------------------------------------------------------------------------- #
def _reference(x, wr, br, we, be):
    x32 = x.astype(jnp.float32)
    pooled = jnp.mean(x32, axis=(2, 3))                       # (B, C)
    r = pooled @ wr.T + br                                    # (B, C_se)
    r = r * jax.nn.sigmoid(r)                                 # silu (swish)
    e = r @ we.T + be                                         # (B, C)
    gate = jax.nn.sigmoid(e)
    return x32 * gate[:, :, None, None]


if __name__ == "__main__":
    # Module config: in_dim=4, expand=False -> dim=4;
    # squeeze_expansion_ratio=0.25 -> dim_se = max(1, int(4*0.25)) = 1.
    B, C, H, W = 2, 4, 16, 16
    C_se = max(1, int(C * 0.25))

    key = jax.random.PRNGKey(0)
    kx, kwr, kbr, kwe, kbe = jax.random.split(key, 5)
    x = jax.random.normal(kx, (B, C, H, W), dtype=jnp.float32)
    w_reduce = jax.random.normal(kwr, (C_se, C), dtype=jnp.float32) * 0.1
    b_reduce = jax.random.normal(kbr, (C_se,), dtype=jnp.float32) * 0.1
    w_expand = jax.random.normal(kwe, (C, C_se), dtype=jnp.float32) * 0.1
    b_expand = jax.random.normal(kbe, (C,), dtype=jnp.float32) * 0.1

    # 1) float32, fused single-pass path (module default dtype; tight tolerance).
    out = jax.block_until_ready(
        squeeze_excite(x, w_reduce, b_reduce, w_expand, b_expand))
    ref = _reference(x, w_reduce, b_reduce, w_expand, b_expand)
    assert out.shape == (B, C, H, W)
    assert out.dtype == jnp.float32
    assert jnp.allclose(out, ref, atol=1e-5, rtol=1e-5), "f32 fused mismatch"

    # 2) bf16 storage, fused path: HBM traffic and the big multiply stay bf16,
    #    gate math in f32 inside the kernel.
    x_bf16 = x.astype(jnp.bfloat16)
    out_bf16 = jax.block_until_ready(
        squeeze_excite(x_bf16, w_reduce, b_reduce, w_expand, b_expand))
    ref_bf16 = _reference(x_bf16, w_reduce, b_reduce, w_expand, b_expand)
    assert out_bf16.dtype == jnp.bfloat16
    assert jnp.allclose(out_bf16.astype(jnp.float32), ref_bf16,
                        atol=2e-2, rtol=2e-2), "bf16 fused mismatch"

    # 3) Fallback two-pass path with a ragged, multi-tile spatial axis
    #    (HW = 576, tile capped to 128 -> 5 tiles, last one masked).
    B2, C2, H2, W2 = 2, 8, 24, 24
    kx2, kwr2, kbr2, kwe2, kbe2 = jax.random.split(jax.random.PRNGKey(1), 5)
    C2_se = max(1, int(C2 * 0.25))
    x2 = jax.random.normal(kx2, (B2, C2, H2, W2), dtype=jnp.float32)
    wr2 = jax.random.normal(kwr2, (C2_se, C2), dtype=jnp.float32) * 0.1
    br2 = jax.random.normal(kbr2, (C2_se,), dtype=jnp.float32) * 0.1
    we2 = jax.random.normal(kwe2, (C2, C2_se), dtype=jnp.float32) * 0.1
    be2 = jax.random.normal(kbe2, (C2,), dtype=jnp.float32) * 0.1
    out2 = jax.block_until_ready(
        squeeze_excite(x2, wr2, br2, we2, be2,
                       force_two_pass=True, max_hw_tile=128))
    ref2 = _reference(x2, wr2, br2, we2, be2)
    assert jnp.allclose(out2, ref2, atol=1e-5, rtol=1e-5), "two-pass mismatch"

    print("KERNEL_OK")
</pallas_src>

<mosaic_0001>
module attributes {stable_mosaic.version = 11 : i64} {
  func.func @_fused_kernel(%arg0: i32, %arg1: memref<1x4x256xf32, #tpu.memory_space<vmem>>, %arg2: memref<4x1xf32, #tpu.memory_space<vmem>>, %arg3: memref<1x1xf32, #tpu.memory_space<vmem>>, %arg4: memref<4x1xf32, #tpu.memory_space<vmem>>, %arg5: memref<4x1xf32, #tpu.memory_space<vmem>>, %arg6: memref<1x4x256xf32, #tpu.memory_space<vmem>>) attributes {dimension_semantics = [#tpu.dimension_semantics<parallel>], iteration_bounds = array<i64: 2>, scalar_prefetch = 0 : i64, scratch_operands = 0 : i64, tpu.core_type = #tpu.core_type<tc>, window_params = [{transform_indices = @transform_0, window_bounds = array<i64: 1, 4, 256>}, {pipeline_mode = #tpu.pipeline_mode<synchronous>, transform_indices = @transform_1, window_bounds = array<i64: 4, 1>}, {pipeline_mode = #tpu.pipeline_mode<synchronous>, transform_indices = @transform_2, window_bounds = array<i64: 1, 1>}, {pipeline_mode = #tpu.pipeline_mode<synchronous>, transform_indices = @transform_3, window_bounds = array<i64: 4, 1>}, {pipeline_mode = #tpu.pipeline_mode<synchronous>, transform_indices = @transform_4, window_bounds = array<i64: 4, 1>}, {transform_indices = @transform_5, window_bounds = array<i64: 1, 4, 256>}]} {
    %c0 = arith.constant 0 : index
    %c0_0 = arith.constant 0 : index
    %c0_1 = arith.constant 0 : index
    %0 = vector.load %arg1[%c0, %c0_0, %c0_1] : memref<1x4x256xf32, #tpu.memory_space<vmem>>, vector<1x4x256xf32>
    %1 = vector.shape_cast %0 : vector<1x4x256xf32> to vector<4x256xf32>
    %cst = arith.constant dense<0.000000e+00> : vector<4xf32>
    %2 = vector.multi_reduction <add>, %1, %cst [1] : vector<4x256xf32> to vector<4xf32>
    %3 = vector.shape_cast %2 : vector<4xf32> to vector<4x1xf32>
    %cst_2 = arith.constant 3.906250e-03 : f32
    %4 = vector.broadcast %cst_2 : f32 to vector<4x1xf32>
    %5 = arith.mulf %3, %4 : vector<4x1xf32>
    %c0_3 = arith.constant 0 : index
    %c0_4 = arith.constant 0 : index
    %6 = vector.load %arg2[%c0_3, %c0_4] : memref<4x1xf32, #tpu.memory_space<vmem>>, vector<4x1xf32>
    %7 = arith.mulf %6, %5 : vector<4x1xf32>
    %cst_5 = arith.constant dense<0.000000e+00> : vector<1xf32>
    %8 = vector.multi_reduction <add>, %7, %cst_5 [0] : vector<4x1xf32> to vector<1xf32>
    %9 = vector.shape_cast %8 : vector<1xf32> to vector<1x1xf32>
    %c0_6 = arith.constant 0 : index
    %c0_7 = arith.constant 0 : index
    %10 = vector.load %arg3[%c0_6, %c0_7] : memref<1x1xf32, #tpu.memory_space<vmem>>, vector<1x1xf32>
    %11 = arith.addf %9, %10 : vector<1x1xf32>
    %12 = arith.negf %11 : vector<1x1xf32>
    %13 = math.exp %12 : vector<1x1xf32>
    %cst_8 = arith.constant 1.000000e+00 : f32
    %14 = vector.broadcast %cst_8 : f32 to vector<1x1xf32>
    %15 = arith.addf %14, %13 : vector<1x1xf32>
    %16 = arith.divf %14, %15 : vector<1x1xf32>
    %17 = arith.mulf %11, %16 : vector<1x1xf32>
    %c0_9 = arith.constant 0 : index
    %c0_10 = arith.constant 0 : index
    %18 = vector.load %arg4[%c0_9, %c0_10] : memref<4x1xf32, #tpu.memory_space<vmem>>, vector<4x1xf32>
    %19 = vector.broadcast %17 : vector<1x1xf32> to vector<4x1xf32>
    %20 = arith.mulf %18, %19 : vector<4x1xf32>
    %cst_11 = arith.constant dense<0.000000e+00> : vector<4xf32>
    %21 = vector.multi_reduction <add>, %20, %cst_11 [1] : vector<4x1xf32> to vector<4xf32>
    %22 = vector.shape_cast %21 : vector<4xf32> to vector<4x1xf32>
    %c0_12 = arith.constant 0 : index
    %c0_13 = arith.constant 0 : index
    %23 = vector.load %arg5[%c0_12, %c0_13] : memref<4x1xf32, #tpu.memory_space<vmem>>, vector<4x1xf32>
    %24 = arith.addf %22, %23 : vector<4x1xf32>
    %25 = arith.negf %24 : vector<4x1xf32>
    %26 = math.exp %25 : vector<4x1xf32>
    %cst_14 = arith.constant 1.000000e+00 : f32
    %27 = vector.broadcast %cst_14 : f32 to vector<4x1xf32>
    %28 = arith.addf %27, %26 : vector<4x1xf32>
    %29 = arith.divf %27, %28 : vector<4x1xf32>
    %c0_15 = arith.constant 0 : index
    %c0_16 = arith.constant 0 : index
    %c0_17 = arith.constant 0 : index
    %30 = vector.load %arg1[%c0_15, %c0_16, %c0_17] : memref<1x4x256xf32, #tpu.memory_space<vmem>>, vector<1x4x256xf32>
    %31 = vector.shape_cast %30 : vector<1x4x256xf32> to vector<4x256xf32>
    %32 = vector.broadcast %29 : vector<4x1xf32> to vector<4x256xf32>
    %33 = arith.mulf %31, %32 : vector<4x256xf32>
    %c0_18 = arith.constant 0 : index
    %c0_19 = arith.constant 0 : index
    %c0_20 = arith.constant 0 : index
    %34 = vector.load %arg6[%c0_18, %c0_19, %c0_20] : memref<1x4x256xf32, #tpu.memory_space<vmem>>, vector<1x4x256xf32>
    %35 = vector.shape_cast %34 : vector<1x4x256xf32> to vector<4x256xf32>
    %36 = vector.shape_cast %33 : vector<4x256xf32> to vector<1x4x256xf32>
    tpu.vector_store %arg6[%c0_18, %c0_19, %c0_20], %36 {strides = array<i32>} : memref<1x4x256xf32, #tpu.memory_space<vmem>>, vector<1x4x256xf32>,
    return
  }
  func.func @transform_0(%arg0: i32) -> (i32, i32, i32) {
    %c0_i32 = arith.constant 0 : i32
    %c0_i32_0 = arith.constant 0 : i32
    %c0_i32_1 = arith.constant 0 : i32
    return %arg0, %c0_i32, %c0_i32_0 : i32, i32, i32
  }
  func.func @transform_1(%arg0: i32) -> (i32, i32) {
    %c0_i32 = arith.constant 0 : i32
    %c0_i32_0 = arith.constant 0 : i32
    %c0_i32_1 = arith.constant 0 : i32
    return %c0_i32, %c0_i32_0 : i32, i32
  }
  func.func @transform_2(%arg0: i32) -> (i32, i32) {
    %c0_i32 = arith.constant 0 : i32
    %c0_i32_0 = arith.constant 0 : i32
    %c0_i32_1 = arith.constant 0 : i32
    return %c0_i32, %c0_i32_0 : i32, i32
  }
  func.func @transform_3(%arg0: i32) -> (i32, i32) {
    %c0_i32 = arith.constant 0 : i32
    %c0_i32_0 = arith.constant 0 : i32
    %c0_i32_1 = arith.constant 0 : i32
    return %c0_i32, %c0_i32_0 : i32, i32
  }
  func.func @transform_4(%arg0: i32) -> (i32, i32) {
    %c0_i32 = arith.constant 0 : i32
    %c0_i32_0 = arith.constant 0 : i32
    %c0_i32_1 = arith.constant 0 : i32
    return %c0_i32, %c0_i32_0 : i32, i32
  }
  func.func @transform_5(%arg0: i32) -> (i32, i32, i32) {
    %c0_i32 = arith.constant 0 : i32
    %c0_i32_0 = arith.constant 0 : i32
    %c0_i32_1 = arith.constant 0 : i32
    return %arg0, %c0_i32, %c0_i32_0 : i32, i32, i32
  }
}

</mosaic_0001>

<bundles_post_ra>
// kernel: tpu_custom_call.1
= control target key start
LH: loop header
LB: loop body
LE: loop exit
PB: predicated region body
PF: predicated region fallthrough
CT: control target
= control target key end

     0   :  { %s634_s0 = inlined_call_operand.vmem [shape: f32[2,4,256], index: 0, kind: input, shape index: {}]   ;;  %s635_s1 = inlined_call_operand.vmem [shape: f32[4,1], index: 1, kind: input, shape index: {}]   ;;  %s636_s2 = inlined_call_operand.<no memory space> [shape: f32[1,1], index: 2, kind: input, shape index: {}]   ;;  %s637_s3 = inlined_call_operand.vmem [shape: f32[4,1], index: 3, kind: input, shape index: {}]   ;;  %s638_s4 = inlined_call_operand.vmem [shape: f32[4,1], index: 4, kind: input, shape index: {}]   ;;  %s639_s5 = inlined_call_operand.hbm [shape: f32[2,4,256], index: 5, kind: output, shape index: {}]  }
   0x1   :  { %v10_v0 = vstv %s636_s2 }
   0x2   :  { %11 = vst [vmem:[#allocation2] sm:$0x1] %v10_v0 }
   0x3   :  { %12 = vsyncpa [#allocation4], 0 }
   0x4   :  { %14 = vsyncpa [#allocation4 + $0x1], 0  ;;  %s525_s20 = smov 0   ;;  %s527_s21 = smov 0  }
   0x5   :  { %s529_s22 = smov 0   ;;  %s531_s23 = smov 0  }
   0x6 LB: > { %s546_s2 = sadd.s32 4294967295, %s487_s23   ;;  %s358_s24 = sadd.s32 4294967294, %s487_s23   ;;  %s487_s23 = sphi %s531_s23, %s645_s23   ;;  %s483_s22 = sphi %s529_s22, %s644_s22   ;;  %s479_s21 = sphi %s527_s21, %s643_s21   ;;  %s475_s20 = sphi %s525_s20, %s642_s20  }
   0x7   : > { %s550_s25 = sadd.s32 1, %s487_s23   ;;  %s137_s26 = sadd.s32 1, %s483_s22 }
   0x8   : > { %s134_s27 = ssub.s32 %s487_s23, %s550_s25  ;;  %p147_p0 = scmp.ne.s32.totalorder %s483_s22, %s479_s21 }
   0x9   : > { %p135_p1 = scmp.eq.s32.totalorder %s134_s27, 0  ;;  %p148_p2 = scmp.eq.s32.totalorder %s546_s2, 1 }
   0xa   : > { %p153_p3 = scmp.ne.s32.totalorder %s479_s21, %s475_s20  ;;  %p154_p4 = scmp.eq.s32.totalorder %s358_s24, 1 }
   0xb   : > { %s561_s28 = scalar_select %p135_p1, %s483_s22, %s137_s26  }
   0xc   : > { %p563_p5 = por %p148_p2, %p147_p0  ;;  %p567_p6 = por %p154_p4, %p153_p3 }
   0xd   : > { %p361_p7 = scmp.ge.s32.totalorder %s487_s23, 1  ;;  %p192_p8 = scmp.lt.s32.totalorder %s487_s23, 3 }
   0xf   : > { %p193_p9 = pnand %p361_p7, %p192_p8 }
  0x10   : > { %p220_p10 = scmp.lt.s32.totalorder (!%p193_p9), %s546_s2, 1  ;;  %vm229_vm0 = vcmask (!%p193_p9), 1043456   ;;  %v489_v6 = vmov (!%p193_p9), 0   ;;  %v236_v7 = vld [vmem:[%s635_s1] sm:$0xf] (!%p193_p9)  ;;  %vm238_vm1 = vcmask (!%p193_p9), 3072   ;;  %v256_v23 = vlaneseq (!%p193_p9) }
  0x11   : > { %196 = sbr.rel (%p193_p9) target bundleno = 401 (0x191), region = 40  ;;  %415 = vset.pattern.permute.xlu0 (!%p193_p9), %v489_v6  ;;  %v246_v17 = vld [vmem:[#allocation2] sm:$0x1] (!%p193_p9)  ;;  %v490_v37 = vmov (!%p193_p9), 839922192   ;;  %s217_s17 = sand.u32 (!%p193_p9), 1, %s479_s21  }
  0x12   : > { %v257_v24 = vshrl.u32 (!%p193_p9), %v256_v23, 7  ;;  %v255_v28 = vld [vmem:[%s637_s3] sm:$0xf] (!%p193_p9)  ;;  %v275_v38 = vunpack.c.l.s4 (!%p193_p9), %v490_v37  ;;  %s362_s18 = sshll.u32 (!%p193_p9), %s217_s17, 3  ;;  %s373_s19 = sshll.u32 (!%p193_p9), %s546_s2, 7 }
  0x13   : > { %v262_v30 = vld [vmem:[%s638_s4] sm:$0xf] (!%p193_p9)  ;;  %s219_s24 = scalar_lea.vmem (!%p193_p9), [#allocation3], %s362_s18  ;;  %s285_s8 = scalar_lea.sflag (!%p193_p9), [#allocation4], %s217_s17 }
  0x14   : > { %v258_v25 = vsub.s32 (!%p193_p9), 0, %v257_v24  ;;  %v276_v39 = vunpack.c.0.s8 (!%p193_p9), %v275_v38  ;;  %s299_s26 = sshll.u32 (!%p193_p9), %s219_s24, 4  ;;  %s594_s26 = int_to_ptr.vmem [resolvable:$true] %s299_s26 }
  0x15   : > { %s425_s9 = scalar_lea.vmem (!%p193_p9), %s594_s26, 128 }
  0x16   : > { %v279_v40 = vsub.s32 (!%p193_p9), %v276_v39, %v257_v24  ;;  %p426_p11 = scmp.ne.s32.totalorder (!%p193_p9), %s594_s26, %s425_s9 }
  0x18   : > { %s221_s6 = scalar_select %p220_p10, %s546_s2, 1 }
  0x19   : > { %p427_p12 = pnand %p426_p11, %p563_p5  ;;  %s491_s2 = smov [#allocation3]  }
  0x1a   : > { %s372_s7 = sshll.u32 %s221_s6, 3 }
  0x1b   : > { %s224_s10 = scalar_lea.vmem %s634_s0, %s372_s7  ;;  %s592_s7 = scalar_lea.hbm %s639_s5, %s373_s19 }
  0x1c   : > { %v225_v1 = vld [vmem:[%s224_s10] sm:$0xff]  ;;  %p428_p13 = pneg %p427_p12  ;;  %s429_s10 = sshll.u32 %s491_s2, 4  ;;  %s430_s10 = int_to_ptr.vmem [resolvable:$false] %s429_s10 }
  0x1d   : > { %v227_v2 = vcombine.high %v225_v1, %v225_v1  ;;  %v230_v3 = vsel %vm229_vm0, %v225_v1, 0.0  ;;  %s431_s11 = scalar_lea.vmem %s430_s10, 256  ;;  %p432_p0 = scmp.lt.s32.totalorder %s594_s26, %s430_s10 }
  0x1e   : > { %p433_p1 = scmp.lt.s32.totalorder %s431_s11, %s425_s9 }
  0x1f   : > { %v231_v4 = vsel %vm229_vm0, %v227_v2, 0.0 }
  0x20   : > { %v232_v5 = vadd.f32 %v231_v4, %v230_v3  ;;  %p434_p2 = por %p433_p1, %p432_p0 }
  0x22   : > { %233 = vadd.xlane.f32.xlu0 %v232_v5  ;;  %p435_p3 = pnand %p434_p2, %p428_p13 }
  0xaf   : > { %v234_v8 = vpop.xlane.xlu0 %233 }
  0xb0   : > { %v235_v9 = vmul.f32 0.00390625, %v234_v8 }
  0xb2   : > { %v237_v10 = vmul.f32 %v236_v7, %v235_v9 }
  0xb4   : > { %v239_v11 = vsel %vm238_vm1, %v237_v10, 0.0 }
  0xb5   : > { %v240_v12 = vrot.slane %v239_v11, 4 }
  0xb7   : > { %v241_v13 = vadd.f32 %v240_v12, %v239_v11 }
  0xb9   : > { %v242_v14 = vrot.slane %v241_v13, 2 }
  0xbb   : > { %v243_v15 = vadd.f32 %v242_v14, %v241_v13 }
  0xbd   : > { %v244_v16 = vrot.slane %v243_v15, 1 }
  0xbf   : > { %v245_v18 = vadd.f32 %v244_v16, %v243_v15 }
  0xc1   : > { %v247_v19 = vadd.f32 %v246_v17, %v245_v18 }
  0xc3   : > { %v365_v20 = vmul.f32 -1.442695, %v247_v19 }
  0xc5   : > { %417 = vpow2.f32 %v365_v20 }
  0xcf   : > { %v418_v21 = vpop.eup %417 }
  0xd0   : > { %v251_v22 = vadd.f32 1.0, %v418_v21 }
  0xd2   : > { %419 = vrcp.f32 %v251_v22 }
  0xdc   : > { %v420_v26 = vpop.eup %419 }
  0xdd   : > { %v254_v27 = vmul.f32 %v420_v26, %v247_v19 }
  0xdf   : > { %v259_v29 = vrot.slane %v254_v27, %v258_v25 }
  0xe1   : > { %v260_v31 = vmul.f32 %v259_v29, %v255_v28 }
  0xe3   : > { %v263_v32 = vadd.f32 %v262_v30, %v260_v31 }
  0xe5   : > { %v366_v33 = vmul.f32 -1.442695, %v263_v32 }
  0xe7   : > { %421 = vpow2.f32 %v366_v33 }
  0xf1   : > { %v422_v34 = vpop.eup %421 }
  0xf2   : > { %v267_v35 = vadd.f32 1.0, %v422_v34 }
  0xf4   : > { %423 = vrcp.f32 %v267_v35 }
  0xfe   : > { %v424_v36 = vpop.eup %423 }
  0xff   : > { %272 = vperm.xlu0 %415, %v424_v36  }
 0x17e   : > { %v273_v41 = vpop.permute.xlu0 %272 }
 0x17f   : > { %v280_v42 = vrot.slane %v273_v41, %v279_v40 }
 0x181   : > { %v282_v43 = vmul.f32 %v280_v42, %v225_v1 }
 0x183   : > { %283 = vst [vmem:[%s219_s24] sm:$0xff] %v282_v43 }
 0x184   : > { %438 = shalt.err (!%p435_p3)
}
 0x185   : > { %s439_s12 = scalar_lea.hbm %s592_s7, 128  ;;  %s443_s15 = scalar_lea.hbm %s639_s5, 256 }
 0x186   : > { %p440_p4 = scmp.ne.s32.totalorder %s592_s7, %s439_s12  ;;  %p444_p9 = scmp.lt.u32.totalorder %s592_s7, %s639_s5 }
 0x187   : > { %p445_p10 = scmp.lt.u32.totalorder %s443_s15, %s439_s12  ;;  %p447_p12 = scmp.lt.u32.totalorder %s439_s12, %s592_s7 }
 0x188   : > { %p441_p7 = pnand %p440_p4, %p563_p5 }
 0x189   : > { %p446_p11 = por %p445_p10, %p444_p9 }
 0x18a   : > { %p442_p8 = pneg %p441_p7 }
 0x18b   : > { %p448_p13 = por %p447_p12, %p446_p11 }
 0x18d   : > { %p449_p0 = pnand %p448_p13, %p442_p8 }
 0x18f   : > { %452 = shalt.err (!%p449_p0)
}
 0x190   : > { %374 = dma.vmem_to_hbm [thread:$0]  (%p563_p5), %s594_s26, 128, %s592_s7, %s285_s8  }
 0x191 PF: > { %p380_p1 = scmp.ge.s32.totalorder %s487_s23, 2  ;;  %s311_s18 = sand.u32 1, %s475_s20  }
 0x192   : > { %s312_s19 = scalar_lea.sflag [#allocation4], %s311_s18 }
 0x193   : > { %p377_p2 = pnand %p380_p1, %p567_p6 }
 0x195   : > { %470 = dma.done.wait (!%p377_p2), %s312_s19, 128  }
 0x196   : > { %472 = vsyncadd (!%p377_p2), %s312_s19, 4294967168  ;;  %p17_p3 = scmp.ge.s32.totalorder %s550_s25, 4   ;;  %s642_s20 = smov %s479_s21 }
 0x197   : > { %s643_s21 = smov %s483_s22  ;;  %s644_s22 = smov %s561_s28 }
 0x198   : > { %s645_s23 = smov %s550_s25  ;;  %19 = sbr.rel (!%p17_p3) target bundleno = 6 (0x6), region = 75 }
 0x19f   :  { %317 = vsyncpa [#allocation4], 1 }
 0x1a0   :  { %319 = vsyncpa [#allocation4 + $0x1], 1 }

</bundles_post_ra>
